<compile_context>
chip_gen: v6e
topology: v6e:2x2x1
jax: 0.10.0
libtpu: 0.0.40
codegen_flags: <defaults>
</compile_context>

<pallas_src>
import functools

import jax
import jax.numpy as jnp
from jax.experimental import pallas as pl
from jax.experimental.pallas import tpu as pltpu


# ---------------------------------------------------------------------------
# Kernel (shared body; head selected statically)
# ---------------------------------------------------------------------------
def _coherent_mlp_kernel(x_ref, w1_ref, b1_ref, w2_ref, b2_ref, o_ref, *,
                         apply_softmax, c_out):
    # In-kernel f32 -> bf16 cast of the batch tile (no separate XLA cast pass
    # over x, which dominates HBM traffic for this kernel).
    x = x_ref[...].astype(w1_ref.dtype)

    # base_network: Linear -> ReLU   (MXU matmul, f32 accumulation, f32 VPU)
    h = jnp.dot(x, w1_ref[...], preferred_element_type=jnp.float32)
    h = jnp.maximum(h + b1_ref[...], 0.0)

    # Second Linear.  w2/b2 are zero-padded to a lane-dense 128-column output
    # and (for regularize=True) already carry the folded class-difference head.
    logits = jnp.dot(h.astype(w2_ref.dtype), w2_ref[...],
                     preferred_element_type=jnp.float32)
    logits = logits + b2_ref[...]

    if apply_softmax:
        c_pad = logits.shape[-1]
        if c_out != c_pad:
            # Mask the zero-padded lanes out of the softmax reduction.
            col = jax.lax.broadcasted_iota(jnp.int32, logits.shape, 1)
            logits = jnp.where(col < c_out, logits, -1e30)
        m = jnp.max(logits, axis=-1, keepdims=True)
        e = jnp.exp(logits - m)
        s = jnp.sum(e, axis=-1, keepdims=True)
        logits = e / s          # exact divide: rows must sum to 1

    o_ref[...] = logits.astype(o_ref.dtype)


# ---------------------------------------------------------------------------
# Helpers
# ---------------------------------------------------------------------------
def _device_kind():
    try:
        return jax.devices()[0].device_kind.lower()
    except Exception:
        return ""


def _vmem_limit_bytes(kind):
    # v7x has only 64 MiB physical VMEM per TensorCore; v5e/v6e have 128 MiB
    # with a 16/32 MiB scoped default that we raise.
    if "v7" in kind:
        return 48 * 1024 * 1024
    if "v5" in kind or "v6" in kind:
        return 96 * 1024 * 1024
    return 48 * 1024 * 1024      # unknown backend / interpret: conservative


def _round_up(v, m):
    return ((v + m - 1) // m) * m


# ---------------------------------------------------------------------------
# Wrapper
# ---------------------------------------------------------------------------
def coherent_network_forward(x, w1, b1, w2, b2, *, regularize=False,
                             block_b=None, compute_dtype=jnp.bfloat16):
    """Pallas implementation of CoherentNetwork(base_network=MLP).forward.

    x  : [B, D_in] float32
    w1 : [D_in, H], b1 : [H]
    w2 : [H, C],    b2 : [C]
    returns [B, C] softmax probabilities, or [B, 1, C-1] if regularize=True.
    """
    B, Din = x.shape
    H = w1.shape[1]
    C = w2.shape[1]

    if regularize:
        # logits[:, :1] - logits[:, 1:] == h @ (w2[:,:1]-w2[:,1:]) + (b2[:1]-b2[1:])
        # Fold in f32 before the bf16 cast; the head then rides the MXU.
        w2_eff = w2[:, :1] - w2[:, 1:]
        b2_eff = b2[:1] - b2[1:]
        c_out = C - 1
    else:
        w2_eff, b2_eff, c_out = w2, b2, C

    # Lane-dense output: zero-pad the output columns to a multiple of 128 so
    # the per-step store is a full, unmasked vst.  Padded lanes are masked in
    # the kernel's softmax and sliced off below.
    c_pad = _round_up(c_out, 128)
    w2_eff = jnp.pad(w2_eff, ((0, 0), (0, c_pad - c_out)))
    b2_eff = jnp.pad(b2_eff, ((0, c_pad - c_out),))

    # Weights/biases: bf16 matmul operands, f32 biases (tiny, cast once).
    w1_c = w1.astype(compute_dtype)
    w2_c = w2_eff.astype(compute_dtype)
    b1_2d = b1.reshape(1, H).astype(jnp.float32)
    b2_2d = b2_eff.reshape(1, c_pad).astype(jnp.float32)

    # Constant-index operands don't need the default double buffer; request
    # single buffering only when the weight footprint is big enough to matter
    # (frees VMEM for a larger batch tile, mostly on v7x's 64 MiB VMEM).
    w_itemsize = jnp.dtype(compute_dtype).itemsize
    weight_bytes = (Din * H + H * c_pad) * w_itemsize + (H + c_pad) * 4
    const_mode = pl.Buffered(1) if weight_bytes >= (1 << 20) else None
    const_bufs = 1 if const_mode is not None else 2

    kind = _device_kind()
    vmem_limit = _vmem_limit_bytes(kind)

    # Batch tile: largest sublane-aligned tile keeping double-buffered x/out
    # tiles + intermediates + resident weights inside ~75% of the VMEM budget.
    per_row = (2 * Din * 4        # x tile (f32, double-buffered)
               + 2 * c_pad * 4    # out tile (f32, double-buffered)
               + H * 4 + H * 2    # f32 / bf16 hidden intermediates
               + c_pad * 4)       # f32 logits intermediate
    if block_b is None:
        budget = max(int(vmem_limit * 0.75) - const_bufs * weight_bytes,
                     8 * per_row)
        tb = min(2048, budget // per_row)
        if "v7" in kind and B >= 16:
            # Megacore: make sure both TensorCores get a roughly equal tile.
            tb = min(tb, _round_up(pl.cdiv(B, 2), 8))
        tb = B if tb >= B else max(8, (tb // 8) * 8)
    else:
        tb = B if block_b >= B else max(8, (min(block_b, B) // 8) * 8)

    grid = (pl.cdiv(B, tb),)      # ragged tail handled by Pallas partial blocks

    cost = pl.CostEstimate(
        flops=2 * B * (Din * H + H * c_pad),
        transcendentals=0 if regularize else B * c_pad,
        bytes_accessed=(4 * B * Din                        # x (f32, streamed)
                        + w_itemsize * (Din * H + H * c_pad)
                        + 4 * (H + c_pad)
                        + 4 * B * c_pad),                   # output (f32)
    )

    out = pl.pallas_call(
        functools.partial(_coherent_mlp_kernel,
                          apply_softmax=not regularize, c_out=c_out),
        out_shape=jax.ShapeDtypeStruct((B, c_pad), jnp.float32),
        grid=grid,
        in_specs=[
            pl.BlockSpec((tb, Din), lambda i: (i, 0)),      # x: streamed over batch
            pl.BlockSpec((Din, H), lambda i: (0, 0), pipeline_mode=const_mode),
            pl.BlockSpec((1, H), lambda i: (0, 0), pipeline_mode=const_mode),
            pl.BlockSpec((H, c_pad), lambda i: (0, 0), pipeline_mode=const_mode),
            pl.BlockSpec((1, c_pad), lambda i: (0, 0), pipeline_mode=const_mode),
        ],
        out_specs=pl.BlockSpec((tb, c_pad), lambda i: (i, 0)),
        compiler_params=pltpu.CompilerParams(
            dimension_semantics=("parallel",),              # megacore on v7x
            vmem_limit_bytes=vmem_limit,
        ),
        cost_estimate=cost,
    )(x, w1_c, b1_2d, w2_c, b2_2d)

    out = out[:B, :c_out]
    if regularize:
        # torch.unsqueeze(..., dim=1) -> [B, 1, C-1]  (pure glue reshape)
        return out[:, None, :]
    return out


# ---------------------------------------------------------------------------
# Reference (pure JAX, same compute path) for validation
# ---------------------------------------------------------------------------
def _reference(x, w1, b1, w2, b2, *, regularize=False,
               compute_dtype=jnp.bfloat16):
    if regularize:
        w2 = w2[:, :1] - w2[:, 1:]
        b2 = b2[:1] - b2[1:]
    h = jnp.dot(x.astype(compute_dtype), w1.astype(compute_dtype),
                preferred_element_type=jnp.float32) + b1
    h = jnp.maximum(h, 0.0)
    logits = jnp.dot(h.astype(compute_dtype), w2.astype(compute_dtype),
                     preferred_element_type=jnp.float32) + b2
    if regularize:
        return logits[:, None, :]
    return jax.nn.softmax(logits, axis=1)


if __name__ == "__main__":
    # Small shapes; also run a forced 8-row tile so the multi-step grid with a
    # ragged (partial) last block is exercised.
    # TODO(synk): base_network is unspecified in the torch module; a
    # deterministic synthetic Linear->ReLU->Linear MLP stands in for it.
    B, Din, H, C = 20, 32, 64, 8

    key = jax.random.PRNGKey(0)
    kx, kw1, kb1, kw2, kb2 = jax.random.split(key, 5)

    x = jax.random.normal(kx, (B, Din), dtype=jnp.float32)
    w1 = jax.random.normal(kw1, (Din, H), dtype=jnp.float32) * 0.1
    b1 = jax.random.normal(kb1, (H,), dtype=jnp.float32) * 0.01
    w2 = jax.random.normal(kw2, (H, C), dtype=jnp.float32) * 0.1
    b2 = jax.random.normal(kb2, (C,), dtype=jnp.float32) * 0.01

    # regularize=False branch (default): softmax over the class axis.
    out_softmax = jax.block_until_ready(
        coherent_network_forward(x, w1, b1, w2, b2, regularize=False))
    out_softmax_tiled = jax.block_until_ready(
        coherent_network_forward(x, w1, b1, w2, b2, regularize=False, block_b=8))
    # regularize=True branch: class-difference, unsqueezed to [B, 1, C-1].
    out_reg = jax.block_until_ready(
        coherent_network_forward(x, w1, b1, w2, b2, regularize=True))

    ref_softmax = _reference(x, w1, b1, w2, b2, regularize=False)
    ref_reg = _reference(x, w1, b1, w2, b2, regularize=True)

    assert out_softmax.shape == (B, C)
    assert out_softmax_tiled.shape == (B, C)
    assert out_reg.shape == (B, 1, C - 1)
    # bf16 MXU inputs -> slightly loose tolerance vs the f32 softmax path.
    assert jnp.allclose(out_softmax, ref_softmax, atol=2e-3, rtol=2e-3)
    assert jnp.allclose(out_softmax_tiled, ref_softmax, atol=2e-3, rtol=2e-3)
    assert jnp.allclose(out_reg, ref_reg, atol=2e-3, rtol=2e-3)
    # Exact divide in the softmax -> rows sum to 1 to f32 accuracy.
    assert jnp.allclose(jnp.sum(out_softmax, axis=1), 1.0, atol=1e-3)
    assert jnp.allclose(jnp.sum(out_softmax_tiled, axis=1), 1.0, atol=1e-3)

    print("KERNEL_OK")
</pallas_src>

<mosaic_0001>
module attributes {stable_mosaic.version = 11 : i64} {
  func.func @_coherent_mlp_kernel(%arg0: i32, %arg1: memref<20x32xf32, #tpu.memory_space<vmem>>, %arg2: memref<32x64xbf16, #tpu.memory_space<vmem>>, %arg3: memref<1x64xf32, #tpu.memory_space<vmem>>, %arg4: memref<64x128xbf16, #tpu.memory_space<vmem>>, %arg5: memref<1x128xf32, #tpu.memory_space<vmem>>, %arg6: memref<20x128xf32, #tpu.memory_space<vmem>>) attributes {dimension_semantics = [#tpu.dimension_semantics<parallel>], iteration_bounds = array<i64: 1>, scalar_prefetch = 0 : i64, scratch_operands = 0 : i64, tpu.core_type = #tpu.core_type<tc>, window_params = [{transform_indices = @transform_0, window_bounds = array<i64: 20, 32>}, {pipeline_mode = #tpu.pipeline_mode<synchronous>, transform_indices = @transform_1, window_bounds = array<i64: 32, 64>}, {pipeline_mode = #tpu.pipeline_mode<synchronous>, transform_indices = @transform_2, window_bounds = array<i64: 1, 64>}, {pipeline_mode = #tpu.pipeline_mode<synchronous>, transform_indices = @transform_3, window_bounds = array<i64: 64, 128>}, {pipeline_mode = #tpu.pipeline_mode<synchronous>, transform_indices = @transform_4, window_bounds = array<i64: 1, 128>}, {transform_indices = @transform_5, window_bounds = array<i64: 20, 128>}]} {
    %c0 = arith.constant 0 : index
    %c0_0 = arith.constant 0 : index
    %0 = vector.load %arg1[%c0, %c0_0] : memref<20x32xf32, #tpu.memory_space<vmem>>, vector<20x32xf32>
    %1 = arith.truncf %0 : vector<20x32xf32> to vector<20x32xbf16>
    %c0_1 = arith.constant 0 : index
    %c0_2 = arith.constant 0 : index
    %2 = vector.load %arg2[%c0_1, %c0_2] : memref<32x64xbf16, #tpu.memory_space<vmem>>, vector<32x64xbf16>
    %cst = arith.constant dense<0.000000e+00> : vector<20x64xf32>
    %3 = tpu.matmul %1, %2, %cst {dimension_numbers = #tpu.dot_dimension_numbers<[1], [0], [0], [1], [0, 0, 1, 1], [], []>} : vector<20x32xbf16>, vector<32x64xbf16>, vector<20x64xf32> -> vector<20x64xf32>
    %c0_3 = arith.constant 0 : index
    %c0_4 = arith.constant 0 : index
    %4 = vector.load %arg3[%c0_3, %c0_4] : memref<1x64xf32, #tpu.memory_space<vmem>>, vector<1x64xf32>
    %5 = vector.broadcast %4 : vector<1x64xf32> to vector<20x64xf32>
    %6 = arith.addf %3, %5 : vector<20x64xf32>
    %cst_5 = arith.constant 0.000000e+00 : f32
    %7 = vector.broadcast %cst_5 : f32 to vector<20x64xf32>
    %8 = arith.maximumf %6, %7 : vector<20x64xf32>
    %9 = arith.truncf %8 : vector<20x64xf32> to vector<20x64xbf16>
    %c0_6 = arith.constant 0 : index
    %c0_7 = arith.constant 0 : index
    %10 = vector.load %arg4[%c0_6, %c0_7] : memref<64x128xbf16, #tpu.memory_space<vmem>>, vector<64x128xbf16>
    %cst_8 = arith.constant dense<0.000000e+00> : vector<20x128xf32>
    %11 = tpu.matmul %9, %10, %cst_8 {dimension_numbers = #tpu.dot_dimension_numbers<[1], [0], [0], [1], [0, 0, 1, 1], [], []>} : vector<20x64xbf16>, vector<64x128xbf16>, vector<20x128xf32> -> vector<20x128xf32>
    %c0_9 = arith.constant 0 : index
    %c0_10 = arith.constant 0 : index
    %12 = vector.load %arg5[%c0_9, %c0_10] : memref<1x128xf32, #tpu.memory_space<vmem>>, vector<1x128xf32>
    %13 = vector.broadcast %12 : vector<1x128xf32> to vector<20x128xf32>
    %14 = arith.addf %11, %13 : vector<20x128xf32>
    %15 = tpu.iota {dimensions = array<i32: 1>} : vector<20x128xi32>
    %c8_i32 = arith.constant 8 : i32
    %16 = vector.broadcast %c8_i32 : i32 to vector<20x128xi32>
    %17 = arith.cmpi slt, %15, %16 : vector<20x128xi32>
    %cst_11 = arith.constant -1.000000e+30 : f32
    %18 = vector.broadcast %cst_11 : f32 to vector<20x128xf32>
    %19 = arith.select %17, %14, %18 : vector<20x128xi1>, vector<20x128xf32>
    %cst_12 = arith.constant dense<0xFF800000> : vector<20xf32>
    %20 = vector.multi_reduction <maximumf>, %19, %cst_12 [1] : vector<20x128xf32> to vector<20xf32>
    %21 = vector.shape_cast %20 : vector<20xf32> to vector<20x1xf32>
    %22 = vector.broadcast %21 : vector<20x1xf32> to vector<20x128xf32>
    %23 = arith.subf %19, %22 : vector<20x128xf32>
    %24 = math.exp %23 : vector<20x128xf32>
    %cst_13 = arith.constant dense<0.000000e+00> : vector<20xf32>
    %25 = vector.multi_reduction <add>, %24, %cst_13 [1] : vector<20x128xf32> to vector<20xf32>
    %26 = vector.shape_cast %25 : vector<20xf32> to vector<20x1xf32>
    %27 = vector.broadcast %26 : vector<20x1xf32> to vector<20x128xf32>
    %28 = arith.divf %24, %27 : vector<20x128xf32>
    %c0_14 = arith.constant 0 : index
    %c0_15 = arith.constant 0 : index
    %29 = vector.load %arg6[%c0_14, %c0_15] : memref<20x128xf32, #tpu.memory_space<vmem>>, vector<20x128xf32>
    tpu.vector_store %arg6[%c0_14, %c0_15], %28 {strides = array<i32>} : memref<20x128xf32, #tpu.memory_space<vmem>>, vector<20x128xf32>,
    return
  }
  func.func @transform_0(%arg0: i32) -> (i32, i32) {
    %c0_i32 = arith.constant 0 : i32
    %c0_i32_0 = arith.constant 0 : i32
    return %arg0, %c0_i32 : i32, i32
  }
  func.func @transform_1(%arg0: i32) -> (i32, i32) {
    %c0_i32 = arith.constant 0 : i32
    %c0_i32_0 = arith.constant 0 : i32
    %c0_i32_1 = arith.constant 0 : i32
    return %c0_i32, %c0_i32_0 : i32, i32
  }
  func.func @transform_2(%arg0: i32) -> (i32, i32) {
    %c0_i32 = arith.constant 0 : i32
    %c0_i32_0 = arith.constant 0 : i32
    %c0_i32_1 = arith.constant 0 : i32
    return %c0_i32, %c0_i32_0 : i32, i32
  }
  func.func @transform_3(%arg0: i32) -> (i32, i32) {
    %c0_i32 = arith.constant 0 : i32
    %c0_i32_0 = arith.constant 0 : i32
    %c0_i32_1 = arith.constant 0 : i32
    return %c0_i32, %c0_i32_0 : i32, i32
  }
  func.func @transform_4(%arg0: i32) -> (i32, i32) {
    %c0_i32 = arith.constant 0 : i32
    %c0_i32_0 = arith.constant 0 : i32
    %c0_i32_1 = arith.constant 0 : i32
    return %c0_i32, %c0_i32_0 : i32, i32
  }
  func.func @transform_5(%arg0: i32) -> (i32, i32) {
    %c0_i32 = arith.constant 0 : i32
    %c0_i32_0 = arith.constant 0 : i32
    return %arg0, %c0_i32 : i32, i32
  }
}

</mosaic_0001>

<bundles_post_ra>
// kernel: tpu_custom_call.1
= control target key start
LH: loop header
LB: loop body
LE: loop exit
PB: predicated region body
PF: predicated region fallthrough
CT: control target
= control target key end

     0   :  { %10 = vsyncpa [#allocation3], 0  ;;  %s520_s0 = inlined_call_operand.hbm [shape: f32[20,32], index: 0, kind: input, shape index: {}]   ;;  %s521_s1 = inlined_call_operand.hbm [shape: bf16[32,64], index: 1, kind: input, shape index: {}]   ;;  %s522_s2 = inlined_call_operand.vmem [shape: f32[1,64], index: 2, kind: input, shape index: {}]   ;;  %s523_s3 = inlined_call_operand.hbm [shape: bf16[64,128], index: 3, kind: input, shape index: {}]   ;;  %s524_s4 = inlined_call_operand.vmem [shape: f32[1,128], index: 4, kind: input, shape index: {}]   ;;  %s525_s5 = inlined_call_operand.hbm [shape: f32[20,128], index: 5, kind: output, shape index: {}]  }
   0x1   :  { %11 = vsyncpa [#allocation6], 0 }
   0x2   :  { %12 = vsyncpa [#allocation4], 0  ;;  %s456_s18 = smov [#allocation5]  }
   0x3   :  { %s30_s19 = sshll.u32 %s456_s18, 4  ;;  %s31_s19 = int_to_ptr.vmem [resolvable:$true] %s30_s19 }
   0x4   :  { %s378_s20 = scalar_lea.vmem %s31_s19, 256  ;;  %p383_p1 = scmp.lt.s32.totalorder %s31_s19, %s31_s19 }
   0x5   :  { %p379_p0 = scmp.ne.s32.totalorder %s31_s19, %s378_s20  ;;  %p384_p2 = scmp.lt.s32.totalorder %s378_s20, %s378_s20 }
   0x7   :  { %p385_p3 = por %p384_p2, %p383_p1 }
   0x9   :  { %p386_p4 = pnand %p385_p3, %p379_p0 }
   0xb   :  { %389 = shalt.err (!%p386_p4)
}
   0xc   :  { %s457_s21 = smov 64   ;;  %s458_s22 = smov 4  }
   0xd   :  { %36 = dma.hbm_to_vmem [thread:$0]  %s521_s1, 256, %s31_s19, [#allocation6], %s457_s21, %s457_s21, %s458_s22  }
   0xe   :  { %s459_s25 = smov [#allocation2]  }
   0xf   :  { %s18_s26 = sshll.u32 %s459_s25, 4  ;;  %s19_s26 = int_to_ptr.vmem [resolvable:$true] %s18_s26 }
  0x10   :  { %s398_s27 = scalar_lea.vmem %s19_s26, 384  ;;  %p403_p6 = scmp.lt.s32.totalorder %s19_s26, %s19_s26 }
  0x11   :  { %p399_p5 = scmp.ne.s32.totalorder %s19_s26, %s398_s27  ;;  %p404_p7 = scmp.lt.s32.totalorder %s398_s27, %s398_s27 }
  0x13   :  { %p405_p8 = por %p404_p7, %p403_p6 }
  0x15   :  { %p406_p9 = pnand %p405_p8, %p399_p5 }
  0x17   :  { %409 = shalt.err (!%p406_p9)
}
  0x18   :  { %s460_s28 = smov 128   ;;  %s461_s29 = smov 8  }
  0x19   :  { %24 = dma.hbm_to_vmem [thread:$0]  %s520_s0, 384, %s19_s26, [#allocation3], %s460_s28, %s460_s28, %s461_s29  }
  0x1a   :  { %s462_s1 = smov [#allocation7]  }
  0x1b   :  { %s44_s7 = sshll.u32 %s462_s1, 4  ;;  %s45_s7 = int_to_ptr.vmem [resolvable:$true] %s44_s7 }
  0x1c   :  { %s418_s8 = scalar_lea.vmem %s45_s7, 512  ;;  %p423_p11 = scmp.lt.s32.totalorder %s45_s7, %s45_s7 }
  0x1d   :  { %p419_p10 = scmp.ne.s32.totalorder %s45_s7, %s418_s8  ;;  %p424_p12 = scmp.lt.s32.totalorder %s418_s8, %s418_s8 }
  0x1f   :  { %p425_p13 = por %p424_p12, %p423_p11 }
  0x21   :  { %p426_p0 = pnand %p425_p13, %p419_p10 }
  0x23   :  { %429 = shalt.err (!%p426_p0)
}
  0x24   :  { %50 = dma.hbm_to_vmem [thread:$0]  %s523_s3, 512, %s45_s7, [#allocation6], %s457_s21, %s457_s21, %s458_s22  }
  0x25   :  { %450 = dma.done.wait [#allocation3], 384  }
  0x26   :  { %451 = vsyncadd [#allocation3], 4294966912 }
  0x27   :  { %452 = dma.done.wait [#allocation6], 768  }
  0x28   :  { %453 = vsyncadd [#allocation6], 4294966528  ;;  %v352_v0 = vld [vmem:[#allocation5 + $0x8] sm:$0xff]   ;;  %v353_v1 = vld [vmem:[#allocation5] sm:$0xff]   ;;  %vm91_vm0 = vcmask 261120   ;;  %vm190_vm1 = vcmask 523264   ;;  %v245_v24 = vlaneseq }
  0x29   :  { %324 = vmatprep.subr.bf16.mxu0 %v352_v0  ;;  %v63_v2 = vld [vmem:[#allocation2] sm:$0xff]  ;;  %v64_v3 = vld [vmem:[#allocation2 + $0x8] sm:$0xff]  ;;  %v65_v4 = vld [vmem:[#allocation2 + $0x10] sm:$0xf]  ;;  %vm255_vm3 = vcmask 1043456  }
  0x2a   :  { %325 = vmatpush3.bf16.msra.mxu0 %v352_v0  ;;  %v66_v5 = vpack.c.bf16 %v64_v3, %v63_v2  ;;  %v354_v6 = vld [vmem:[#allocation7 + $0x18] sm:$0xff]   ;;  %v67_v7 = vpack.c.bf16 %v65_v4, %v65_v4  ;;  %v355_v8 = vld [vmem:[#allocation7 + $0x10] sm:$0xff]   ;;  %v356_v9 = vld [vmem:[#allocation7 + $0x8] sm:$0xff]   ;;  %v246_v25 = vand.u32 127, %v245_v24 }
  0x2b   :  { %326 = vmatprep.subr.bf16.mxu0 %v353_v1  ;;  %332 = vmatprep.subr.bf16.mxu1 %v354_v6  ;;  %v357_v10 = vld [vmem:[#allocation7] sm:$0xff]   ;;  %v302_v12 = vld [vmem:[%s522_s2] ss:$0 sm:$0xff]  ;;  %s463_s2 = smov [#allocation8]  }
  0x2c   :  { %328 = vmatprep.mubr.msk.bf16.mxu0 %vm91_vm0, %v66_v5  ;;  %333 = vmatpush3.bf16.msra.mxu1 %v354_v6  ;;  %v307_v26 = vld [vmem:[%s524_s4] ss:$0 sm:$0xff]  ;;  %vm247_vm2 = vcmp.lt.s32.totalorder %v246_v25, 8  ;;  %s289_s4 = sshll.u32 %s463_s2, 4  ;;  %s290_s4 = int_to_ptr.vmem [resolvable:$true] %s289_s4 }
  0x2d   :  { %334 = vmatprep.subr.bf16.mxu1 %v355_v8  ;;  %s430_s13 = scalar_lea.vmem %s290_s4, 384  ;;  %p435_p2 = scmp.lt.s32.totalorder %s290_s4, %s290_s4 }
  0x2e   :  { %327 = vmatpush3.bf16.msra.mxu0 %v353_v1  ;;  %p431_p1 = scmp.ne.s32.totalorder %s290_s4, %s430_s13  ;;  %p436_p3 = scmp.lt.s32.totalorder %s430_s13, %s430_s13 }
  0x30   :  { %335 = vmatpush3.bf16.msra.mxu1 %v355_v8  ;;  %p437_p4 = por %p436_p3, %p435_p2 }
  0x31   :  { %329 = vmatmul.mubr.msk.bf16.vlgmr.msra.gmra.mxu0 %vm91_vm0, %v67_v7  ;;  %336 = vmatprep.subr.bf16.mxu1 %v356_v9 }
  0x32   :  { %p438_p5 = pnand %p437_p4, %p431_p1 }
  0x34   :  { %337 = vmatpush3.bf16.msra.mxu1 %v356_v9 }
  0x35   :  { %338 = vmatprep.subr.bf16.mxu1 %v357_v10 }
  0x38   :  { %339 = vmatpush3.bf16.msra.mxu1 %v357_v10 }
  0xf1   :  { %v330_v11 = vpop.f32.mrf.mxu0 }
  0xf2   :  { %v141_v14 = vadd.f32 %v330_v11, %v302_v12 }
  0xf3   :  { %v132_v13 = vpop.f32.mrf.mxu0 }
  0xf4   :  { %v133_v16 = vadd.f32 %v302_v12, %v132_v13  ;;  %v148_v19 = vmax.f32 %v141_v14, 0.0 }
  0xf5   :  { %v331_v15 = vpop.f32.mrf.mxu0 }
  0xf6   :  { %v146_v20 = vmax.f32 %v133_v16, 0.0  ;;  %v150_v23 = vpack.c.bf16 %v148_v19, %v148_v19 }
  0xf7   :  { %v135_v17 = vpop.f32.mrf.mxu0 }
  0xf8   :  { %v136_v18 = vadd.f32 %v302_v12, %v135_v17 }
  0xfa   :  { %v147_v21 = vmax.f32 %v136_v18, 0.0 }
  0xfc   :  { %v149_v22 = vpack.c.bf16 %v147_v21, %v146_v20 }
  0xfe   :  { %340 = vmatprep.mubr.msk.bf16.mxu1 %vm190_vm1, %v149_v22 }
  0xff   :  { %341 = vmatmul.mubr.msk.bf16.vlgmr.msra.gmra.mxu1 %vm190_vm1, %v150_v23 }
 0x1bf   :  { %v342_v27 = vpop.f32.mrf.mxu1 }
 0x1c0   :  { %v240_v28 = vadd.f32 %v342_v27, %v307_v26 }
 0x1c1   :  { %v231_v29 = vpop.f32.mrf.mxu1 }
 0x1c2   :  { %v250_v30 = vsel %vm247_vm2, %v240_v28, -1e+30  ;;  %v232_v31 = vadd.f32 %v307_v26, %v231_v29 }
 0x1c3   :  { %v343_v32 = vpop.f32.mrf.mxu1  ;;  %v256_v33 = vsel %vm255_vm3, %v250_v30, -inf }
 0x1c4   :  { %257 = vmax.xlane.f32.xlu0 %v256_v33  ;;  %v248_v36 = vsel %vm247_vm2, %v232_v31, -1e+30 }
 0x1c5   :  { %v234_v34 = vpop.f32.mrf.mxu1 }
 0x1c6   :  { %v235_v35 = vadd.f32 %v307_v26, %v234_v34 }
 0x1c8   :  { %251 = vmax.xlane.f32.xlu0 %v248_v36  ;;  %v249_v37 = vsel %vm247_vm2, %v235_v35, -1e+30 }
 0x1c9   :  { %253 = vmax.xlane.f32.xlu1 %v249_v37 }
 0x24d   :  { %v258_v38 = vpop.xlane.xlu0 %257 }
 0x24e   :  { %v261_v39 = vsub.f32 %v250_v30, %v258_v38 }
 0x250   :  { %v266_v40 = vmul.f32 1.442695, %v261_v39 }
 0x251   :  { %v252_v41 = vpop.xlane.xlu0 %251 }
 0x252   :  { %v259_v42 = vsub.f32 %v248_v36, %v252_v41  ;;  %v254_v43 = vpop.xlane.xlu1 %253  ;;  %358 = vpow2.f32 %v266_v40 }
 0x253   :  { %v260_v44 = vsub.f32 %v249_v37, %v254_v43 }
 0x254   :  { %v262_v45 = vmul.f32 1.442695, %v259_v42 }
 0x255   :  { %v264_v46 = vmul.f32 1.442695, %v260_v44 }
 0x256   :  { %360 = vpow2.f32 %v262_v45 }
 0x257   :  { %362 = vpow2.f32 %v264_v46 }
 0x25f   :  { %v359_v47 = vpop.eup %358 }
 0x260   :  { %v272_v50 = vsel %vm255_vm3, %v359_v47, 0.0 }
 0x263   :  { %v361_v48 = vpop.eup %360 }
 0x264   :  { %v363_v49 = vpop.eup %362  ;;  %268 = vadd.xlane.f32.xlu1 %v361_v48 }
 0x265   :  { %270 = vadd.xlane.f32.xlu0 %v363_v49 }
 0x268   :  { %273 = vadd.xlane.f32.xlu1 %v272_v50 }
 0x2ed   :  { %v269_v51 = vpop.xlane.xlu1 %268 }
 0x2ee   :  { %364 = vrcp.f32 %v269_v51  ;;  %v271_v52 = vpop.xlane.xlu0 %270 }
 0x2ef   :  { %366 = vrcp.f32 %v271_v52 }
 0x2f1   :  { %v274_v53 = vpop.xlane.xlu1 %273 }
 0x2f2   :  { %368 = vrcp.f32 %v274_v53 }
 0x2fb   :  { %v365_v54 = vpop.eup %364 }
 0x2fc   :  { %v367_v55 = vpop.eup %366  ;;  %v276_v56 = vmul.f32 %v365_v54, %v361_v48 }
 0x2fd   :  { %v278_v57 = vmul.f32 %v367_v55, %v363_v49 }
 0x2fe   :  { %281 = vst [vmem:[#allocation8] sm:$0xff] %v276_v56 }
 0x2ff   :  { %v369_v58 = vpop.eup %368  ;;  %282 = vst [vmem:[#allocation8 + $0x8] sm:$0xff] %v278_v57 }
 0x300   :  { %v280_v59 = vmul.f32 %v369_v58, %v359_v47 }
 0x302   :  { %283 = vst [vmem:[#allocation8 + $0x10] sm:$0xf] %v280_v59 }
 0x303   :  { %441 = shalt.err (!%p438_p5)
}
 0x304   :  { %295 = dma.vmem_to_hbm [thread:$0]  %s290_s4, 384, %s525_s5, [#allocation4], %s460_s28, %s460_s28, %s461_s29  }
 0x305   :  { %454 = dma.done.wait [#allocation4], 384  }
 0x306   :  { %455 = vsyncadd [#allocation4], 4294966912 }
 0x307   :  { %299 = vsyncpa [#allocation3], 1 }
 0x308   :  { %300 = vsyncpa [#allocation6], 1 }
 0x309   :  { %301 = vsyncpa [#allocation4], 1 }

</bundles_post_ra>
